<compile_context>
chip_gen: v6e
topology: v6e:2x2x1
jax: 0.10.0
libtpu: 0.0.40
codegen_flags: <defaults>
</compile_context>

<pallas_src>
import jax
import jax.numpy as jnp
import numpy as np
from jax.experimental import pallas as pl
from jax.experimental.pallas import tpu as pltpu


def _round_up(x, m):
    return (x + m - 1) // m * m


def _mlp_head_kernel(pos_ref, info_ref,
                     w1p_ref, w1i_ref, b1_ref,
                     w2_ref, b2_ref,
                     w3_ref, b3_ref,
                     wh_ref, bh_ref,
                     out_ref):
    """One batch tile of the MultiInputNet head. bf16 dots, f32 accumulate."""
    pos = pos_ref[...].astype(jnp.bfloat16)
    info = info_ref[...].astype(jnp.bfloat16)

    # linear1 on the (pos | info) concat, expressed as a split matmul.
    h = (jnp.dot(pos, w1p_ref[...], preferred_element_type=jnp.float32)
         + jnp.dot(info, w1i_ref[...], preferred_element_type=jnp.float32)
         + b1_ref[...])
    h = jnp.maximum(h, 0.0)

    h = (jnp.dot(h.astype(jnp.bfloat16), w2_ref[...],
                 preferred_element_type=jnp.float32) + b2_ref[...])
    h = jnp.maximum(h, 0.0)

    h = (jnp.dot(h.astype(jnp.bfloat16), w3_ref[...],
                 preferred_element_type=jnp.float32) + b3_ref[...])
    h = jnp.maximum(h, 0.0)

    # Merged (mean | value) head -> one lane-dense 128-wide output slab.
    out_ref[...] = (jnp.dot(h.astype(jnp.bfloat16), wh_ref[...],
                            preferred_element_type=jnp.float32)
                    + bh_ref[...]).astype(out_ref.dtype)


def multi_input_net_forward(pos, info, params, *, tile_m=512):
    """Returns (action, value, None) matching the PyTorch module."""
    batch, pos_dim = pos.shape
    info_dim = info.shape[1]
    actions_num = params["actions_num"]
    value_size = params["value_size"]
    head_pad = params["w_head"].shape[1]

    pos = pos.astype(jnp.float32)
    info = info.astype(jnp.float32)

    # Batch tiling: pad the batch so every grid block is full (simple, correct
    # epilogue handling; padded rows are computed on zeros and sliced away).
    # NOTE: at tiny batches this path is pure launch overhead — batch many
    # environments into one call to amortize it.
    tm = tile_m if batch >= tile_m else _round_up(batch, 8)
    padded = _round_up(batch, tm)
    if padded != batch:
        pos = jnp.pad(pos, ((0, padded - batch), (0, 0)))
        info = jnp.pad(info, ((0, padded - batch), (0, 0)))

    grid = (padded // tm,)

    def resident(arr):
        # Same block every grid step -> stays resident in VMEM.
        return pl.BlockSpec(arr.shape, lambda i: (0, 0))

    out = pl.pallas_call(
        _mlp_head_kernel,
        out_shape=jax.ShapeDtypeStruct((padded, head_pad), jnp.float32),
        grid=grid,
        in_specs=[
            pl.BlockSpec((tm, pos_dim), lambda i: (i, 0)),
            pl.BlockSpec((tm, info_dim), lambda i: (i, 0)),
            resident(params["w1_pos"]), resident(params["w1_info"]),
            resident(params["b1"]),
            resident(params["w2"]), resident(params["b2"]),
            resident(params["w3"]), resident(params["b3"]),
            resident(params["w_head"]), resident(params["b_head"]),
        ],
        out_specs=pl.BlockSpec((tm, head_pad), lambda i: (i, 0)),
        compiler_params=pltpu.CompilerParams(
            dimension_semantics=("parallel",)),
    )(pos, info,
      params["w1_pos"], params["w1_info"], params["b1"],
      params["w2"], params["b2"],
      params["w3"], params["b3"],
      params["w_head"], params["b_head"])

    action = out[:batch, :actions_num]
    value = out[:batch, actions_num:actions_num + value_size]
    return action, value, None


def init_params(key, pos_dim, info_dim, hidden, actions_num, value_size):
    """Deterministic synthetic init (PyTorch nn.Linear-style uniform)."""
    in_dim = pos_dim + info_dim
    keys = jax.random.split(key, 10)

    def lin(kw, kb, din, dout):
        bound = 1.0 / np.sqrt(din)
        w = jax.random.uniform(kw, (din, dout), jnp.float32, -bound, bound)
        b = jax.random.uniform(kb, (1, dout), jnp.float32, -bound, bound)
        return w, b

    w1, b1 = lin(keys[0], keys[1], in_dim, hidden)
    w2, b2 = lin(keys[2], keys[3], hidden, hidden)
    w3, b3 = lin(keys[4], keys[5], hidden, hidden)
    wm, bm = lin(keys[6], keys[7], hidden, actions_num)
    wv, bv = lin(keys[8], keys[9], hidden, value_size)

    # Merge the two heads into one zero-padded 128-lane slab.
    head_dim = actions_num + value_size
    head_pad = _round_up(head_dim, 128)
    w_head = (jnp.zeros((hidden, head_pad), jnp.float32)
              .at[:, :actions_num].set(wm)
              .at[:, actions_num:head_dim].set(wv))
    b_head = (jnp.zeros((1, head_pad), jnp.float32)
              .at[:, :actions_num].set(bm)
              .at[:, actions_num:head_dim].set(bv))

    params = dict(
        w1_pos=w1[:pos_dim].astype(jnp.bfloat16),
        w1_info=w1[pos_dim:].astype(jnp.bfloat16),
        b1=b1,
        w2=w2.astype(jnp.bfloat16), b2=b2,
        w3=w3.astype(jnp.bfloat16), b3=b3,
        w_head=w_head.astype(jnp.bfloat16), b_head=b_head,
        actions_num=actions_num, value_size=value_size,
    )
    raw_f32 = (w1, b1, w2, b2, w3, b3, wm, bm, wv, bv)
    return params, raw_f32


def reference_forward_matched(pos, info, params):
    """Plain-JAX reference with the same bf16-operand / f32-accum math."""
    pos_b = pos.astype(jnp.bfloat16)
    info_b = info.astype(jnp.bfloat16)
    h = (jnp.dot(pos_b, params["w1_pos"], preferred_element_type=jnp.float32)
         + jnp.dot(info_b, params["w1_info"], preferred_element_type=jnp.float32)
         + params["b1"])
    h = jnp.maximum(h, 0.0)
    h = jnp.dot(h.astype(jnp.bfloat16), params["w2"],
                preferred_element_type=jnp.float32) + params["b2"]
    h = jnp.maximum(h, 0.0)
    h = jnp.dot(h.astype(jnp.bfloat16), params["w3"],
                preferred_element_type=jnp.float32) + params["b3"]
    h = jnp.maximum(h, 0.0)
    out = jnp.dot(h.astype(jnp.bfloat16), params["w_head"],
                  preferred_element_type=jnp.float32) + params["b_head"]
    a, v = params["actions_num"], params["value_size"]
    return out[:, :a], out[:, a:a + v]


def reference_forward_f32(pos, info, raw_f32):
    """Pure f32 reference matching the original PyTorch module semantics."""
    w1, b1, w2, b2, w3, b3, wm, bm, wv, bv = raw_f32
    x = jnp.concatenate([pos, info], axis=-1).astype(jnp.float32)
    h = jnp.maximum(x @ w1 + b1, 0.0)
    h = jnp.maximum(h @ w2 + b2, 0.0)
    h = jnp.maximum(h @ w3 + b3, 0.0)
    return h @ wm + bm, h @ wv + bv


if __name__ == "__main__":
    # obs['pos']: [batch, 4], obs['info']: [batch, 12] -> concat dim 16
    batch, pos_dim, info_dim = 2, 4, 12
    hidden, actions_num, value_size = 32, 8, 1

    key = jax.random.PRNGKey(0)
    k_pos, k_info, k_params, k_big = jax.random.split(key, 4)

    pos = jax.random.normal(k_pos, (batch, pos_dim), jnp.float32)
    info = jax.random.normal(k_info, (batch, info_dim), jnp.float32)
    params, raw_f32 = init_params(k_params, pos_dim, info_dim,
                                  hidden, actions_num, value_size)

    action, value, states = multi_input_net_forward(pos, info, params)
    jax.block_until_ready((action, value))

    # Exact-math check against a bf16-matched reference.
    ref_a, ref_v = reference_forward_matched(pos, info, params)
    np.testing.assert_allclose(np.asarray(action), np.asarray(ref_a),
                               rtol=1e-3, atol=1e-3)
    np.testing.assert_allclose(np.asarray(value), np.asarray(ref_v),
                               rtol=1e-3, atol=1e-3)

    # Sanity check against the pure-f32 module semantics (bf16 operand error).
    f32_a, f32_v = reference_forward_f32(pos, info, raw_f32)
    np.testing.assert_allclose(np.asarray(action), np.asarray(f32_a),
                               rtol=5e-2, atol=5e-2)
    np.testing.assert_allclose(np.asarray(value), np.asarray(f32_v),
                               rtol=5e-2, atol=5e-2)

    assert action.shape == (batch, actions_num)
    assert value.shape == (batch, value_size)
    assert states is None

    # Exercise the multi-tile grid path (ragged batch -> padded, grid of 3).
    big_batch = 600
    kp, ki = jax.random.split(k_big)
    pos_b = jax.random.normal(kp, (big_batch, pos_dim), jnp.float32)
    info_b = jax.random.normal(ki, (big_batch, info_dim), jnp.float32)
    a_b, v_b, _ = multi_input_net_forward(pos_b, info_b, params, tile_m=256)
    jax.block_until_ready((a_b, v_b))
    ra, rv = reference_forward_matched(pos_b, info_b, params)
    np.testing.assert_allclose(np.asarray(a_b), np.asarray(ra),
                               rtol=1e-3, atol=1e-3)
    np.testing.assert_allclose(np.asarray(v_b), np.asarray(rv),
                               rtol=1e-3, atol=1e-3)
    assert a_b.shape == (big_batch, actions_num)
    assert v_b.shape == (big_batch, value_size)

    print("KERNEL_OK")
</pallas_src>

<mosaic_0001>
module attributes {stable_mosaic.version = 11 : i64} {
  func.func @_mlp_head_kernel(%arg0: i32, %arg1: memref<8x4xf32, #tpu.memory_space<vmem>>, %arg2: memref<8x12xf32, #tpu.memory_space<vmem>>, %arg3: memref<4x32xbf16, #tpu.memory_space<vmem>>, %arg4: memref<12x32xbf16, #tpu.memory_space<vmem>>, %arg5: memref<1x32xf32, #tpu.memory_space<vmem>>, %arg6: memref<32x32xbf16, #tpu.memory_space<vmem>>, %arg7: memref<1x32xf32, #tpu.memory_space<vmem>>, %arg8: memref<32x32xbf16, #tpu.memory_space<vmem>>, %arg9: memref<1x32xf32, #tpu.memory_space<vmem>>, %arg10: memref<32x128xbf16, #tpu.memory_space<vmem>>, %arg11: memref<1x128xf32, #tpu.memory_space<vmem>>, %arg12: memref<8x128xf32, #tpu.memory_space<vmem>>) attributes {dimension_semantics = [#tpu.dimension_semantics<parallel>], iteration_bounds = array<i64: 1>, scalar_prefetch = 0 : i64, scratch_operands = 0 : i64, tpu.core_type = #tpu.core_type<tc>, window_params = [{transform_indices = @transform_0, window_bounds = array<i64: 8, 4>}, {transform_indices = @transform_1, window_bounds = array<i64: 8, 12>}, {pipeline_mode = #tpu.pipeline_mode<synchronous>, transform_indices = @transform_2, window_bounds = array<i64: 4, 32>}, {pipeline_mode = #tpu.pipeline_mode<synchronous>, transform_indices = @transform_3, window_bounds = array<i64: 12, 32>}, {pipeline_mode = #tpu.pipeline_mode<synchronous>, transform_indices = @transform_4, window_bounds = array<i64: 1, 32>}, {pipeline_mode = #tpu.pipeline_mode<synchronous>, transform_indices = @transform_5, window_bounds = array<i64: 32, 32>}, {pipeline_mode = #tpu.pipeline_mode<synchronous>, transform_indices = @transform_6, window_bounds = array<i64: 1, 32>}, {pipeline_mode = #tpu.pipeline_mode<synchronous>, transform_indices = @transform_7, window_bounds = array<i64: 32, 32>}, {pipeline_mode = #tpu.pipeline_mode<synchronous>, transform_indices = @transform_8, window_bounds = array<i64: 1, 32>}, {pipeline_mode = #tpu.pipeline_mode<synchronous>, transform_indices = @transform_9, window_bounds = array<i64: 32, 128>}, {pipeline_mode = #tpu.pipeline_mode<synchronous>, transform_indices = @transform_10, window_bounds = array<i64: 1, 128>}, {transform_indices = @transform_11, window_bounds = array<i64: 8, 128>}]} {
    %c0 = arith.constant 0 : index
    %c0_0 = arith.constant 0 : index
    %0 = vector.load %arg1[%c0, %c0_0] : memref<8x4xf32, #tpu.memory_space<vmem>>, vector<8x4xf32>
    %1 = arith.truncf %0 : vector<8x4xf32> to vector<8x4xbf16>
    %c0_1 = arith.constant 0 : index
    %c0_2 = arith.constant 0 : index
    %2 = vector.load %arg2[%c0_1, %c0_2] : memref<8x12xf32, #tpu.memory_space<vmem>>, vector<8x12xf32>
    %3 = arith.truncf %2 : vector<8x12xf32> to vector<8x12xbf16>
    %c0_3 = arith.constant 0 : index
    %c0_4 = arith.constant 0 : index
    %4 = vector.load %arg3[%c0_3, %c0_4] : memref<4x32xbf16, #tpu.memory_space<vmem>>, vector<4x32xbf16>
    %cst = arith.constant dense<0.000000e+00> : vector<8x32xf32>
    %5 = tpu.matmul %1, %4, %cst {dimension_numbers = #tpu.dot_dimension_numbers<[1], [0], [0], [1], [0, 0, 1, 1], [], []>} : vector<8x4xbf16>, vector<4x32xbf16>, vector<8x32xf32> -> vector<8x32xf32>
    %c0_5 = arith.constant 0 : index
    %c0_6 = arith.constant 0 : index
    %6 = vector.load %arg4[%c0_5, %c0_6] : memref<12x32xbf16, #tpu.memory_space<vmem>>, vector<12x32xbf16>
    %cst_7 = arith.constant dense<0.000000e+00> : vector<8x32xf32>
    %7 = tpu.matmul %3, %6, %cst_7 {dimension_numbers = #tpu.dot_dimension_numbers<[1], [0], [0], [1], [0, 0, 1, 1], [], []>} : vector<8x12xbf16>, vector<12x32xbf16>, vector<8x32xf32> -> vector<8x32xf32>
    %8 = arith.addf %5, %7 : vector<8x32xf32>
    %c0_8 = arith.constant 0 : index
    %c0_9 = arith.constant 0 : index
    %9 = vector.load %arg5[%c0_8, %c0_9] : memref<1x32xf32, #tpu.memory_space<vmem>>, vector<1x32xf32>
    %10 = vector.broadcast %9 : vector<1x32xf32> to vector<8x32xf32>
    %11 = arith.addf %8, %10 : vector<8x32xf32>
    %cst_10 = arith.constant 0.000000e+00 : f32
    %12 = vector.broadcast %cst_10 : f32 to vector<8x32xf32>
    %13 = arith.maximumf %11, %12 : vector<8x32xf32>
    %14 = arith.truncf %13 : vector<8x32xf32> to vector<8x32xbf16>
    %c0_11 = arith.constant 0 : index
    %c0_12 = arith.constant 0 : index
    %15 = vector.load %arg6[%c0_11, %c0_12] : memref<32x32xbf16, #tpu.memory_space<vmem>>, vector<32x32xbf16>
    %cst_13 = arith.constant dense<0.000000e+00> : vector<8x32xf32>
    %16 = tpu.matmul %14, %15, %cst_13 {dimension_numbers = #tpu.dot_dimension_numbers<[1], [0], [0], [1], [0, 0, 1, 1], [], []>} : vector<8x32xbf16>, vector<32x32xbf16>, vector<8x32xf32> -> vector<8x32xf32>
    %c0_14 = arith.constant 0 : index
    %c0_15 = arith.constant 0 : index
    %17 = vector.load %arg7[%c0_14, %c0_15] : memref<1x32xf32, #tpu.memory_space<vmem>>, vector<1x32xf32>
    %18 = vector.broadcast %17 : vector<1x32xf32> to vector<8x32xf32>
    %19 = arith.addf %16, %18 : vector<8x32xf32>
    %cst_16 = arith.constant 0.000000e+00 : f32
    %20 = vector.broadcast %cst_16 : f32 to vector<8x32xf32>
    %21 = arith.maximumf %19, %20 : vector<8x32xf32>
    %22 = arith.truncf %21 : vector<8x32xf32> to vector<8x32xbf16>
    %c0_17 = arith.constant 0 : index
    %c0_18 = arith.constant 0 : index
    %23 = vector.load %arg8[%c0_17, %c0_18] : memref<32x32xbf16, #tpu.memory_space<vmem>>, vector<32x32xbf16>
    %cst_19 = arith.constant dense<0.000000e+00> : vector<8x32xf32>
    %24 = tpu.matmul %22, %23, %cst_19 {dimension_numbers = #tpu.dot_dimension_numbers<[1], [0], [0], [1], [0, 0, 1, 1], [], []>} : vector<8x32xbf16>, vector<32x32xbf16>, vector<8x32xf32> -> vector<8x32xf32>
    %c0_20 = arith.constant 0 : index
    %c0_21 = arith.constant 0 : index
    %25 = vector.load %arg9[%c0_20, %c0_21] : memref<1x32xf32, #tpu.memory_space<vmem>>, vector<1x32xf32>
    %26 = vector.broadcast %25 : vector<1x32xf32> to vector<8x32xf32>
    %27 = arith.addf %24, %26 : vector<8x32xf32>
    %cst_22 = arith.constant 0.000000e+00 : f32
    %28 = vector.broadcast %cst_22 : f32 to vector<8x32xf32>
    %29 = arith.maximumf %27, %28 : vector<8x32xf32>
    %30 = arith.truncf %29 : vector<8x32xf32> to vector<8x32xbf16>
    %c0_23 = arith.constant 0 : index
    %c0_24 = arith.constant 0 : index
    %31 = vector.load %arg10[%c0_23, %c0_24] : memref<32x128xbf16, #tpu.memory_space<vmem>>, vector<32x128xbf16>
    %cst_25 = arith.constant dense<0.000000e+00> : vector<8x128xf32>
    %32 = tpu.matmul %30, %31, %cst_25 {dimension_numbers = #tpu.dot_dimension_numbers<[1], [0], [0], [1], [0, 0, 1, 1], [], []>} : vector<8x32xbf16>, vector<32x128xbf16>, vector<8x128xf32> -> vector<8x128xf32>
    %c0_26 = arith.constant 0 : index
    %c0_27 = arith.constant 0 : index
    %33 = vector.load %arg11[%c0_26, %c0_27] : memref<1x128xf32, #tpu.memory_space<vmem>>, vector<1x128xf32>
    %34 = vector.broadcast %33 : vector<1x128xf32> to vector<8x128xf32>
    %35 = arith.addf %32, %34 : vector<8x128xf32>
    %c0_28 = arith.constant 0 : index
    %c0_29 = arith.constant 0 : index
    %36 = vector.load %arg12[%c0_28, %c0_29] : memref<8x128xf32, #tpu.memory_space<vmem>>, vector<8x128xf32>
    tpu.vector_store %arg12[%c0_28, %c0_29], %35 {strides = array<i32>} : memref<8x128xf32, #tpu.memory_space<vmem>>, vector<8x128xf32>,
    return
  }
  func.func @transform_0(%arg0: i32) -> (i32, i32) {
    %c0_i32 = arith.constant 0 : i32
    %c0_i32_0 = arith.constant 0 : i32
    return %arg0, %c0_i32 : i32, i32
  }
  func.func @transform_1(%arg0: i32) -> (i32, i32) {
    %c0_i32 = arith.constant 0 : i32
    %c0_i32_0 = arith.constant 0 : i32
    return %arg0, %c0_i32 : i32, i32
  }
  func.func @transform_2(%arg0: i32) -> (i32, i32) {
    %c0_i32 = arith.constant 0 : i32
    %c0_i32_0 = arith.constant 0 : i32
    %c0_i32_1 = arith.constant 0 : i32
    return %c0_i32, %c0_i32_0 : i32, i32
  }
  func.func @transform_3(%arg0: i32) -> (i32, i32) {
    %c0_i32 = arith.constant 0 : i32
    %c0_i32_0 = arith.constant 0 : i32
    %c0_i32_1 = arith.constant 0 : i32
    return %c0_i32, %c0_i32_0 : i32, i32
  }
  func.func @transform_4(%arg0: i32) -> (i32, i32) {
    %c0_i32 = arith.constant 0 : i32
    %c0_i32_0 = arith.constant 0 : i32
    %c0_i32_1 = arith.constant 0 : i32
    return %c0_i32, %c0_i32_0 : i32, i32
  }
  func.func @transform_5(%arg0: i32) -> (i32, i32) {
    %c0_i32 = arith.constant 0 : i32
    %c0_i32_0 = arith.constant 0 : i32
    %c0_i32_1 = arith.constant 0 : i32
    return %c0_i32, %c0_i32_0 : i32, i32
  }
  func.func @transform_6(%arg0: i32) -> (i32, i32) {
    %c0_i32 = arith.constant 0 : i32
    %c0_i32_0 = arith.constant 0 : i32
    %c0_i32_1 = arith.constant 0 : i32
    return %c0_i32, %c0_i32_0 : i32, i32
  }
  func.func @transform_7(%arg0: i32) -> (i32, i32) {
    %c0_i32 = arith.constant 0 : i32
    %c0_i32_0 = arith.constant 0 : i32
    %c0_i32_1 = arith.constant 0 : i32
    return %c0_i32, %c0_i32_0 : i32, i32
  }
  func.func @transform_8(%arg0: i32) -> (i32, i32) {
    %c0_i32 = arith.constant 0 : i32
    %c0_i32_0 = arith.constant 0 : i32
    %c0_i32_1 = arith.constant 0 : i32
    return %c0_i32, %c0_i32_0 : i32, i32
  }
  func.func @transform_9(%arg0: i32) -> (i32, i32) {
    %c0_i32 = arith.constant 0 : i32
    %c0_i32_0 = arith.constant 0 : i32
    %c0_i32_1 = arith.constant 0 : i32
    return %c0_i32, %c0_i32_0 : i32, i32
  }
  func.func @transform_10(%arg0: i32) -> (i32, i32) {
    %c0_i32 = arith.constant 0 : i32
    %c0_i32_0 = arith.constant 0 : i32
    %c0_i32_1 = arith.constant 0 : i32
    return %c0_i32, %c0_i32_0 : i32, i32
  }
  func.func @transform_11(%arg0: i32) -> (i32, i32) {
    %c0_i32 = arith.constant 0 : i32
    %c0_i32_0 = arith.constant 0 : i32
    return %arg0, %c0_i32 : i32, i32
  }
}

</mosaic_0001>

<bundles_post_ra>
// kernel: tpu_custom_call.1
= control target key start
LH: loop header
LB: loop body
LE: loop exit
PB: predicated region body
PF: predicated region fallthrough
CT: control target
= control target key end

     0   :  { %16 = vsyncpa [#allocation3], 0  ;;  %s746_s0 = inlined_call_operand.vmem [shape: f32[8,4], index: 0, kind: input, shape index: {}]   ;;  %s747_s1 = inlined_call_operand.hbm [shape: f32[8,12], index: 1, kind: input, shape index: {}]   ;;  %s748_s2 = inlined_call_operand.vmem [shape: bf16[4,32], index: 2, kind: input, shape index: {}]   ;;  %s749_s3 = inlined_call_operand.hbm [shape: bf16[12,32], index: 3, kind: input, shape index: {}]   ;;  %s750_s4 = inlined_call_operand.vmem [shape: f32[1,32], index: 4, kind: input, shape index: {}]   ;;  %s751_s5 = inlined_call_operand.vmem [shape: bf16[32,32], index: 5, kind: input, shape index: {}]   ;;  %s752_s6 = inlined_call_operand.vmem [shape: f32[1,32], index: 6, kind: input, shape index: {}]   ;;  %s753_s7 = inlined_call_operand.hbm [shape: bf16[32,32], index: 7, kind: input, shape index: {}]   ;;  %s754_s8 = inlined_call_operand.vmem [shape: f32[1,32], index: 8, kind: input, shape index: {}]   ;;  %s755_s9 = inlined_call_operand.hbm [shape: bf16[32,128], index: 9, kind: input, shape index: {}]   ;;  %s756_s10 = inlined_call_operand.vmem [shape: f32[1,128], index: 10, kind: input, shape index: {}]   ;;  %s757_s11 = inlined_call_operand.hbm [shape: f32[8,128], index: 11, kind: output, shape index: {}]  }
   0x1   :  { %17 = vsyncpa [#allocation6], 0 }
   0x2   :  { %18 = vsyncpa [#allocation9], 0 }
   0x3   :  { %19 = vsyncpa [#allocation4], 0  ;;  %s621_s17 = smov [#allocation5]  }
   0x4   :  { %s39_s18 = sshll.u32 %s621_s17, 4  ;;  %s40_s18 = int_to_ptr.vmem [resolvable:$true] %s39_s18 }
   0x5   :  { %s521_s19 = scalar_lea.vmem %s40_s18, 128  ;;  %p526_p1 = scmp.lt.s32.totalorder %s40_s18, %s40_s18 }
   0x6   :  { %p522_p0 = scmp.ne.s32.totalorder %s40_s18, %s521_s19  ;;  %p527_p2 = scmp.lt.s32.totalorder %s521_s19, %s521_s19 }
   0x8   :  { %p528_p3 = por %p527_p2, %p526_p1 }
   0xa   :  { %p529_p4 = pnand %p528_p3, %p522_p0 }
   0xc   :  { %532 = shalt.err (!%p529_p4)
}
   0xd   :  { %s622_s20 = smov 64   ;;  %s623_s21 = smov 4  }
   0xe   :  { %45 = dma.hbm_to_vmem [thread:$0]  %s749_s3, 128, %s40_s18, [#allocation6], %s622_s20, %s622_s20, %s623_s21  }
   0xf   :  { %s624_s24 = smov [#allocation2]   ;;  %s625_s26 = smov [#allocation7]  }
  0x10   :  { %s28_s25 = sshll.u32 %s624_s24, 4  ;;  %s57_s27 = sshll.u32 %s625_s26, 4  ;;  %s29_s25 = int_to_ptr.vmem [resolvable:$true] %s28_s25  ;;  %s58_s27 = int_to_ptr.vmem [resolvable:$true] %s57_s27 }
  0x11   :  { %s541_s28 = scalar_lea.vmem %s29_s25, 128  ;;  %p546_p6 = scmp.lt.s32.totalorder %s29_s25, %s29_s25 }
  0x12   :  { %p542_p5 = scmp.ne.s32.totalorder %s29_s25, %s541_s28  ;;  %p547_p7 = scmp.lt.s32.totalorder %s541_s28, %s541_s28 }
  0x14   :  { %p548_p8 = por %p547_p7, %p546_p6 }
  0x16   :  { %p549_p9 = pnand %p548_p8, %p542_p5 }
  0x18   :  { %552 = shalt.err (!%p549_p9)
}
  0x19   :  { %31 = dma.hbm_to_vmem [thread:$0]  %s747_s1, 128, %s29_s25, [#allocation3]  }
  0x1a   :  { %s561_s12 = scalar_lea.vmem %s58_s27, 256  ;;  %p566_p11 = scmp.lt.s32.totalorder %s58_s27, %s58_s27 }
  0x1b   :  { %p562_p10 = scmp.ne.s32.totalorder %s58_s27, %s561_s12  ;;  %p567_p12 = scmp.lt.s32.totalorder %s561_s12, %s561_s12 }
  0x1d   :  { %p568_p13 = por %p567_p12, %p566_p11 }
  0x1f   :  { %p569_p0 = pnand %p568_p13, %p562_p10 }
  0x21   :  { %572 = shalt.err (!%p569_p0)
}
  0x22   :  { %63 = dma.hbm_to_vmem [thread:$0]  %s753_s7, 256, %s58_s27, [#allocation6], %s622_s20, %s622_s20, %s623_s21  }
  0x23   :  { %s626_s14 = smov [#allocation8]  }
  0x24   :  { %s71_s15 = sshll.u32 %s626_s14, 4  ;;  %s72_s15 = int_to_ptr.vmem [resolvable:$true] %s71_s15 }
  0x25   :  { %s581_s16 = scalar_lea.vmem %s72_s15, 256  ;;  %p586_p2 = scmp.lt.s32.totalorder %s72_s15, %s72_s15 }
  0x26   :  { %p582_p1 = scmp.ne.s32.totalorder %s72_s15, %s581_s16  ;;  %p587_p3 = scmp.lt.s32.totalorder %s581_s16, %s581_s16 }
  0x28   :  { %p588_p4 = por %p587_p3, %p586_p2 }
  0x2a   :  { %p589_p5 = pnand %p588_p4, %p582_p1 }
  0x2c   :  { %592 = shalt.err (!%p589_p5)
}
  0x2d   :  { %77 = dma.hbm_to_vmem [thread:$0]  %s755_s9, 256, %s72_s15, [#allocation9], %s622_s20, %s622_s20, %s623_s21  }
  0x2e   :  { %613 = dma.done.wait [#allocation3], 128  }
  0x2f   :  { %614 = vsyncadd [#allocation3], 4294967168 }
  0x30   :  { %615 = dma.done.wait [#allocation6], 384  }
  0x31   :  { %616 = vsyncadd [#allocation6], 4294966912 }
  0x32   :  { %617 = dma.done.wait [#allocation9], 256  }
  0x33   :  { %618 = vsyncadd [#allocation9], 4294967040  ;;  %v627_v0 = vmov 0.0   ;;  %vm628_vm0 = vmmov 0   ;;  %vm157_vm1 = vcmask 1041408   ;;  %vm109_vm2 = vcmask 1045504  }
  0x34   :  { %467 = vmatprep.subr.bf16.mxu1 %v627_v0  ;;  %461 = vmatprep.subr.bf16.mxu0 %v627_v0  ;;  %v97_v1 = vld [vmem:[%s748_s2] sm:$0x3]  ;;  %v506_v3 = vld [vmem:[#allocation5] sm:$0x3f]   ;;  %vm153_vm3 = vcmask 31744   ;;  %vm105_vm4 = vcmask 97280  }
  0x35   :  { %469 = vmatprep.mubr.msk.bf16.mxu1 %vm628_vm0, %v627_v0  ;;  %463 = vmatprep.mubr.msk.bf16.mxu0 %vm628_vm0, %v627_v0  ;;  %v159_v2 = vsel %vm157_vm1, %v97_v1, 0  ;;  %v93_v4 = vld [vmem:[%s746_s0] sm:$0xff]  ;;  %v111_v7 = vsel %vm109_vm2, %v506_v3, 0  ;;  %v507_v9 = vld [vmem:[%s751_s5 + $0x8] sm:$0xff]   ;;  %v509_v11 = vld [vmem:[#allocation7 + $0x8] sm:$0xff]   ;;  %vm234_vm5 = vcmask 261120  }
  0x36   :  { %v95_v5 = vld [vmem:[#allocation2] sm:$0xff]  ;;  %468 = vmatpush3.bf16.msra.mxu1 %v159_v2  ;;  %v94_v6 = vpack.c.bf16 %v93_v4, %v93_v4  ;;  %462 = vmatpush3.bf16.msra.mxu0 %v111_v7  ;;  %v510_v25 = vld [vmem:[#allocation7] sm:$0xff]   ;;  %v511_v26 = vld [vmem:[#allocation8 + $0x8] sm:$0xff]   ;;  %s629_s27 = smov [#allocation10]  }
  0x37   :  { %v96_v8 = vpack.c.bf16 %v95_v5, %v95_v5  ;;  %481 = vmatprep.subr.bf16.mxu1 %v627_v0  ;;  %473 = vmatprep.subr.bf16.mxu0 %v627_v0  ;;  %v508_v10 = vld [vmem:[%s751_s5] sm:$0xff]   ;;  %s421_s28 = sshll.u32 %s629_s27, 4  ;;  %s422_s28 = int_to_ptr.vmem [resolvable:$true] %s421_s28 }
  0x38   :  { %v435_v14 = vld [vmem:[%s750_s4] ss:$0 sm:$0xff]  ;;  %p598_p7 = scmp.lt.s32.totalorder %s422_s28, %s422_s28 }
  0x39   :  { %470 = vmatmul.mubr.msk.bf16.vlgmr.msra.gmra.mxu1 %vm153_vm3, %v94_v6  ;;  %464 = vmatmul.mubr.msk.bf16.vlgmr.msra.gmra.mxu0 %vm105_vm4, %v96_v8  ;;  %v436_v27 = vld [vmem:[%s752_s6] ss:$0 sm:$0xff] }
  0x3a   :  { %485 = vmatprep.mubr.msk.bf16.mxu1 %vm628_vm0, %v627_v0  ;;  %477 = vmatprep.mubr.msk.bf16.mxu0 %vm628_vm0, %v627_v0  ;;  %v512_v35 = vld [vmem:[#allocation8] sm:$0xff]  }
  0x3b   :  { %474 = vmatpush3.bf16.msra.mxu0 %v507_v9  ;;  %482 = vmatpush3.bf16.msra.mxu1 %v509_v11  ;;  %v440_v36 = vld [vmem:[%s754_s8] ss:$0 sm:$0xff]  ;;  %s593_s8 = scalar_lea.vmem %s422_s28, 128 }
  0x3c   :  { %475 = vmatprep.subr.bf16.mxu0 %v627_v0  ;;  %483 = vmatprep.subr.bf16.mxu1 %v627_v0  ;;  %v444_v44 = vld [vmem:[%s756_s10] ss:$0 sm:$0xff]  ;;  %p594_p6 = scmp.ne.s32.totalorder %s422_s28, %s593_s8  ;;  %p599_p8 = scmp.lt.s32.totalorder %s593_s8, %s593_s8 }
  0x3e   :  { %p600_p9 = por %p599_p8, %p598_p7 }
  0x3f   :  { %476 = vmatpush3.bf16.msra.mxu0 %v508_v10  ;;  %484 = vmatpush3.bf16.msra.mxu1 %v510_v25 }
  0x40   :  { %489 = vmatprep.subr.bf16.mxu0 %v627_v0  ;;  %p601_p10 = pnand %p600_p9, %p594_p6 }
  0xf9   :  { %v195_v12 = vpop.f32.mrf.mxu1  ;;  %v147_v13 = vpop.f32.mrf.mxu0 }
  0xfa   :  { %v196_v16 = vadd.f32 %v195_v12, %v147_v13 }
  0xfb   :  { %v471_v15 = vpop.f32.mrf.mxu1  ;;  %v465_v17 = vpop.f32.mrf.mxu0 }
  0xfc   :  { %v208_v19 = vadd.f32 %v435_v14, %v196_v16 }
  0xfd   :  { %v198_v18 = vpop.f32.mrf.mxu1  ;;  %v150_v20 = vpop.f32.mrf.mxu0 }
  0xfe   :  { %v209_v22 = vmax.f32 %v208_v19, 0.0 }
  0xff   :  { %v472_v21 = vpop.f32.mrf.mxu1  ;;  %v466_v23 = vpop.f32.mrf.mxu0 }
 0x100   :  { %v210_v24 = vpack.c.bf16 %v209_v22, %v209_v22 }
 0x102   :  { %478 = vmatmul.mubr.msk.bf16.vlgmr.msra.gmra.mxu0 %vm234_vm5, %v210_v24 }
 0x103   :  { %493 = vmatprep.mubr.msk.bf16.mxu0 %vm628_vm0, %v627_v0  ;;  %490 = vmatpush3.bf16.msra.mxu0 %v511_v26 }
 0x104   :  { %491 = vmatprep.subr.bf16.mxu0 %v627_v0 }
 0x107   :  { %492 = vmatpush3.bf16.msra.mxu0 %v512_v35 }
 0x1c2   :  { %v272_v28 = vpop.f32.mrf.mxu0 }
 0x1c3   :  { %v273_v29 = vadd.f32 %v436_v27, %v272_v28 }
 0x1c4   :  { %v479_v30 = vpop.f32.mrf.mxu0 }
 0x1c5   :  { %v278_v31 = vmax.f32 %v273_v29, 0.0 }
 0x1c6   :  { %v275_v32 = vpop.f32.mrf.mxu0 }
 0x1c7   :  { %v279_v33 = vpack.c.bf16 %v278_v31, %v278_v31 }
 0x1c8   :  { %v480_v34 = vpop.f32.mrf.mxu0 }
 0x1c9   :  { %486 = vmatmul.mubr.msk.bf16.vlgmr.msra.gmra.mxu1 %vm234_vm5, %v279_v33 }
 0x289   :  { %v340_v37 = vpop.f32.mrf.mxu1 }
 0x28a   :  { %v341_v38 = vadd.f32 %v440_v36, %v340_v37 }
 0x28b   :  { %v487_v39 = vpop.f32.mrf.mxu1 }
 0x28c   :  { %v346_v40 = vmax.f32 %v341_v38, 0.0 }
 0x28d   :  { %v343_v41 = vpop.f32.mrf.mxu1 }
 0x28e   :  { %v347_v42 = vpack.c.bf16 %v346_v40, %v346_v40 }
 0x28f   :  { %v488_v43 = vpop.f32.mrf.mxu1 }
 0x290   :  { %494 = vmatmul.mubr.msk.bf16.vlgmr.msra.gmra.mxu0 %vm234_vm5, %v347_v42 }
 0x350   :  { %v408_v45 = vpop.f32.mrf.mxu0 }
 0x351   :  { %v409_v46 = vadd.f32 %v444_v44, %v408_v45 }
 0x352   :  { %v495_v47 = vpop.f32.mrf.mxu0 }
 0x353   :  { %414 = vst [vmem:[#allocation10] sm:$0xff] %v409_v46 }
 0x354   :  { %v411_v48 = vpop.f32.mrf.mxu0 }
 0x355   :  { %604 = shalt.err (!%p601_p10)
}
 0x356   :  { %424 = dma.vmem_to_hbm [thread:$0]  %s422_s28, 128, %s757_s11, [#allocation4]   ;;  %v496_v49 = vpop.f32.mrf.mxu0 }
 0x357   :  { %619 = dma.done.wait [#allocation4], 128  }
 0x358   :  { %620 = vsyncadd [#allocation4], 4294967168 }
 0x359   :  { %428 = vsyncpa [#allocation3], 1 }
 0x35a   :  { %429 = vsyncpa [#allocation6], 1 }
 0x35b   :  { %430 = vsyncpa [#allocation9], 1 }
 0x35c   :  { %431 = vsyncpa [#allocation4], 1 }

</bundles_post_ra>
